<compile_context>
chip_gen: v5e
topology: v5e:2x2
jax: 0.10.0
libtpu: 0.0.40
codegen_flags: <defaults>
</compile_context>

<pallas_src>
import jax
import jax.numpy as jnp
from jax import lax
from jax.experimental import pallas as pl
from jax.experimental.pallas import tpu as pltpu


# ----------------------------- Pallas kernel ------------------------------ #
def conv_bn_silu_kernel(x_ref, w_ref, b_ref, out_ref):
    """One grid step = one halo'd row block of one image.

    x_ref  : (1, th + 2*pad, Wp*C1)  padded input rows, lanes = (width, cin)
    w_ref  : (k,  Wp*C1,  W*C2)      banded BN-folded conv weight (per dy tap)
    b_ref  : (1,  W*C2)              BN-folded bias tiled over width (f32)
    out_ref: (1,  th,     W*C2)      SiLU(BN(conv(x))) rows, lane-dense
    """
    k = w_ref.shape[0]          # static
    th = out_ref.shape[1]       # static

    xblk = x_ref[0]             # (th + 2*pad, Wp*C1)  load block once
    wblk = w_ref[...]           # (k, Wp*C1, W*C2)     resident weights

    # k row-shifted banded matmuls, accumulated in f32 on the MXU.
    acc = jnp.dot(xblk[0:th, :], wblk[0], preferred_element_type=jnp.float32)
    for dy in range(1, k):
        acc = acc + jnp.dot(xblk[dy:dy + th, :], wblk[dy],
                            preferred_element_type=jnp.float32)

    y = acc + b_ref[...]                 # bias add in f32
    y = y * jax.nn.sigmoid(y)            # SiLU in f32 (EUP)
    out_ref[0] = y.astype(out_ref.dtype)


# ------------------------------- wrapper ----------------------------------- #
def conv_bn_silu_pallas(x_nchw, w_oihw, bn, *, eps=1e-5, stride=1, groups=1,
                        dilation=1, compute_dtype=jnp.bfloat16, th=None,
                        out_dtype=jnp.float32):
    """Forward of yolov9 Conv: SiLU(BN(Conv2d(x)))  (NCHW in / NCHW out)."""
    assert stride == 1 and groups == 1 and dilation == 1, \
        "TODO(synk): only the s=1/g=1/d=1 Conv path is implemented"
    N, C1, H, W = x_nchw.shape
    C2, c1w, kh, kw = w_oihw.shape
    assert c1w == C1 and kh == kw and kh % 2 == 1
    k = kh
    pad = k // 2                                     # autopad(k) for odd k

    # ---- fold eval-mode BatchNorm into conv weight + bias (f32) ----
    gamma, beta, mean, var = bn
    scale = gamma / jnp.sqrt(var + eps)                         # (C2,)
    w_f = (w_oihw * scale[:, None, None, None]).astype(jnp.float32)
    b_f = (beta - mean * scale).astype(jnp.float32)             # (C2,)
    wgt = jnp.transpose(w_f, (2, 3, 1, 0))                      # (dy, dx, ci, co)

    # ---- row-block tiling (VMEM-budgeted) ----
    Wp = W + 2 * pad
    if th is None:
        # target ~2 MiB per (double-buffered) input block, cap at 512 rows
        row_bytes = Wp * C1 * jnp.dtype(compute_dtype).itemsize
        th = int(min(H, max(8, (2 << 20) // max(row_bytes, 1)), 512))
    nrb = -(-H // th)            # ceil
    Hp = nrb * th                # pad H up to a multiple of the row tile

    # ---- NCHW -> NHWC, zero pad, fold (width, cin) into the lane dim ----
    x = jnp.transpose(x_nchw, (0, 2, 3, 1))                     # (N, H, W, C1)
    x = jnp.pad(x, ((0, 0), (pad, Hp - H + pad), (pad, pad), (0, 0)))
    x = x.reshape(N, Hp + 2 * pad, Wp * C1)

    # halo'd row blocks: duplicates only 2*pad rows per block (no 9x im2col)
    if nrb == 1:
        xblocks = x
    else:
        xblocks = jnp.stack(
            [x[:, rb * th: rb * th + th + 2 * pad, :] for rb in range(nrb)],
            axis=1).reshape(N * nrb, th + 2 * pad, Wp * C1)
    xblocks = xblocks.astype(compute_dtype)

    # ---- banded (Toeplitz-over-width) weights: output lanes = (width, cout) ----
    v = jnp.arange(Wp)[:, None]          # padded input column index
    w_idx = jnp.arange(W)[None, :]       # output column index
    d = v - w_idx                        # = dx tap index when valid
    valid = (d >= 0) & (d < k)
    dcl = jnp.clip(d, 0, k - 1)
    bands = []
    for dy in range(k):
        g = wgt[dy][dcl] * valid[..., None, None]               # (Wp, W, C1, C2)
        bands.append(jnp.transpose(g, (0, 2, 1, 3)).reshape(Wp * C1, W * C2))
    w_band = jnp.stack(bands, axis=0).astype(compute_dtype)     # (k, Wp*C1, W*C2)
    b_big = jnp.tile(b_f, W).reshape(1, W * C2).astype(jnp.float32)

    # ---- pallas call ----
    M = N * nrb
    out = pl.pallas_call(
        conv_bn_silu_kernel,
        out_shape=jax.ShapeDtypeStruct((M, th, W * C2), out_dtype),
        grid_spec=pltpu.PrefetchScalarGridSpec(
            num_scalar_prefetch=0,
            grid=(M,),
            in_specs=[
                pl.BlockSpec((1, th + 2 * pad, Wp * C1), lambda i: (i, 0, 0)),
                pl.BlockSpec((k, Wp * C1, W * C2), lambda i: (0, 0, 0)),
                pl.BlockSpec((1, W * C2), lambda i: (0, 0)),
            ],
            out_specs=pl.BlockSpec((1, th, W * C2), lambda i: (i, 0, 0)),
        ),
        compiler_params=pltpu.CompilerParams(
            dimension_semantics=("parallel",),
            vmem_limit_bytes=32 * 1024 * 1024,
        ),
    )(xblocks, w_band, b_big)

    out = out.reshape(N, Hp, W, C2)[:, :H]                      # drop row padding
    return jnp.transpose(out, (0, 3, 1, 2))                     # back to NCHW


# --------------------------- pure-JAX references ---------------------------- #
def ref_conv_bn_silu(x_nchw, w_oihw, bn, eps=1e-5):
    x = jnp.transpose(x_nchw, (0, 2, 3, 1)).astype(jnp.float32)
    w_hwio = jnp.transpose(w_oihw, (2, 3, 1, 0)).astype(jnp.float32)
    k = w_oihw.shape[-1]
    p = k // 2
    y = lax.conv_general_dilated(x, w_hwio, (1, 1), ((p, p), (p, p)),
                                 dimension_numbers=("NHWC", "HWIO", "NHWC"))
    gamma, beta, mean, var = bn
    y = (y - mean) * (gamma / jnp.sqrt(var + eps)) + beta
    y = jax.nn.silu(y)
    return jnp.transpose(y, (0, 3, 1, 2))


def ref_conv_bn_silu_lowp(x_nchw, w_oihw, bn, eps, cdt):
    """Same math, operands cast to `cdt`, f32 accumulation (mirrors bf16 path)."""
    gamma, beta, mean, var = bn
    scale = gamma / jnp.sqrt(var + eps)
    w_f = (w_oihw * scale[:, None, None, None]).astype(cdt)
    b_f = (beta - mean * scale).astype(jnp.float32)
    x = jnp.transpose(x_nchw, (0, 2, 3, 1)).astype(cdt)
    w_hwio = jnp.transpose(w_f, (2, 3, 1, 0))
    k = w_oihw.shape[-1]
    p = k // 2
    y = lax.conv_general_dilated(x, w_hwio, (1, 1), ((p, p), (p, p)),
                                 dimension_numbers=("NHWC", "HWIO", "NHWC"),
                                 preferred_element_type=jnp.float32)
    y = jax.nn.silu(y + b_f)
    return jnp.transpose(y, (0, 3, 1, 2))


# --------------------------------- main ------------------------------------ #
if __name__ == "__main__":
    key = jax.random.PRNGKey(0)
    ks = jax.random.split(key, 12)

    N, C1, H, W = 2, 4, 16, 16
    C2 = 8
    x = jax.random.normal(ks[0], (N, C1, H, W), jnp.float32)

    def make_bn(k0, k1, k2, k3, c):
        return (jax.random.uniform(k0, (c,), minval=0.5, maxval=1.5),
                jax.random.normal(k1, (c,)) * 0.1,
                jax.random.normal(k2, (c,)) * 0.1,
                jax.random.uniform(k3, (c,), minval=0.5, maxval=1.5))

    # --- Conv(c1=4, c2=8, k=3, s=1): 3x3 conv + BN + SiLU ---
    w3 = jax.random.normal(ks[1], (C2, C1, 3, 3), jnp.float32) * 0.3
    bn3 = make_bn(ks[2], ks[3], ks[4], ks[5], C2)

    out3 = jax.block_until_ready(
        conv_bn_silu_pallas(x, w3, bn3, compute_dtype=jnp.float32))
    ref3 = jax.block_until_ready(ref_conv_bn_silu(x, w3, bn3))
    assert out3.shape == (N, C2, H, W)
    assert jnp.allclose(out3, ref3, atol=1e-4, rtol=1e-4), \
        float(jnp.max(jnp.abs(out3 - ref3)))

    # bf16 MXU operands (f32 accumulation / f32 SiLU), multi-row-block tiling
    out3_bf = jax.block_until_ready(
        conv_bn_silu_pallas(x, w3, bn3, compute_dtype=jnp.bfloat16, th=8))
    ref3_bf = jax.block_until_ready(
        ref_conv_bn_silu_lowp(x, w3, bn3, 1e-5, jnp.bfloat16))
    assert jnp.allclose(out3_bf, ref3_bf, atol=1e-3, rtol=1e-3), \
        float(jnp.max(jnp.abs(out3_bf - ref3_bf)))

    # --- Conv(c1=4, c2=8, k=1, s=1): default-k constructor, uneven row tiling ---
    w1 = jax.random.normal(ks[6], (C2, C1, 1, 1), jnp.float32) * 0.3
    bn1 = make_bn(ks[7], ks[8], ks[9], ks[10], C2)

    out1 = jax.block_until_ready(
        conv_bn_silu_pallas(x, w1, bn1, compute_dtype=jnp.float32, th=12))
    ref1 = jax.block_until_ready(ref_conv_bn_silu(x, w1, bn1))
    assert out1.shape == (N, C2, H, W)
    assert jnp.allclose(out1, ref1, atol=1e-4, rtol=1e-4), \
        float(jnp.max(jnp.abs(out1 - ref1)))

    print("KERNEL_OK")
</pallas_src>

<mosaic_0001>
module attributes {stable_mosaic.version = 11 : i64} {
  func.func @conv_bn_silu_kernel(%arg0: i32, %arg1: memref<1x18x72xf32, #tpu.memory_space<vmem>>, %arg2: memref<3x72x128xf32, #tpu.memory_space<vmem>>, %arg3: memref<1x128xf32, #tpu.memory_space<vmem>>, %arg4: memref<1x16x128xf32, #tpu.memory_space<vmem>>) attributes {dimension_semantics = [#tpu.dimension_semantics<parallel>], iteration_bounds = array<i64: 2>, scalar_prefetch = 0 : i64, scratch_operands = 0 : i64, tpu.core_type = #tpu.core_type<tc>, window_params = [{transform_indices = @transform_0, window_bounds = array<i64: 1, 18, 72>}, {pipeline_mode = #tpu.pipeline_mode<synchronous>, transform_indices = @transform_1, window_bounds = array<i64: 3, 72, 128>}, {pipeline_mode = #tpu.pipeline_mode<synchronous>, transform_indices = @transform_2, window_bounds = array<i64: 1, 128>}, {transform_indices = @transform_3, window_bounds = array<i64: 1, 16, 128>}]} {
    %c0 = arith.constant 0 : index
    %c0_0 = arith.constant 0 : index
    %c0_1 = arith.constant 0 : index
    %0 = vector.load %arg1[%c0, %c0_0, %c0_1] : memref<1x18x72xf32, #tpu.memory_space<vmem>>, vector<1x18x72xf32>
    %1 = vector.shape_cast %0 : vector<1x18x72xf32> to vector<18x72xf32>
    %c0_2 = arith.constant 0 : index
    %c0_3 = arith.constant 0 : index
    %c0_4 = arith.constant 0 : index
    %2 = vector.load %arg2[%c0_2, %c0_3, %c0_4] : memref<3x72x128xf32, #tpu.memory_space<vmem>>, vector<3x72x128xf32>
    %3 = vector.extract_strided_slice %1 {offsets = [0, 0], sizes = [16, 72], strides = [1, 1]} : vector<18x72xf32> to vector<16x72xf32>
    %4 = vector.extract_strided_slice %2 {offsets = [0, 0, 0], sizes = [1, 72, 128], strides = [1, 1, 1]} : vector<3x72x128xf32> to vector<1x72x128xf32>
    %5 = vector.shape_cast %4 : vector<1x72x128xf32> to vector<72x128xf32>
    %cst = arith.constant dense<0.000000e+00> : vector<16x128xf32>
    %6 = tpu.matmul %3, %5, %cst {dimension_numbers = #tpu.dot_dimension_numbers<[1], [0], [0], [1], [0, 0, 1, 1], [], []>} : vector<16x72xf32>, vector<72x128xf32>, vector<16x128xf32> -> vector<16x128xf32>
    %7 = vector.extract_strided_slice %1 {offsets = [1, 0], sizes = [16, 72], strides = [1, 1]} : vector<18x72xf32> to vector<16x72xf32>
    %8 = vector.extract_strided_slice %2 {offsets = [1, 0, 0], sizes = [1, 72, 128], strides = [1, 1, 1]} : vector<3x72x128xf32> to vector<1x72x128xf32>
    %9 = vector.shape_cast %8 : vector<1x72x128xf32> to vector<72x128xf32>
    %cst_5 = arith.constant dense<0.000000e+00> : vector<16x128xf32>
    %10 = tpu.matmul %7, %9, %cst_5 {dimension_numbers = #tpu.dot_dimension_numbers<[1], [0], [0], [1], [0, 0, 1, 1], [], []>} : vector<16x72xf32>, vector<72x128xf32>, vector<16x128xf32> -> vector<16x128xf32>
    %11 = arith.addf %6, %10 : vector<16x128xf32>
    %12 = vector.extract_strided_slice %1 {offsets = [2, 0], sizes = [16, 72], strides = [1, 1]} : vector<18x72xf32> to vector<16x72xf32>
    %13 = vector.extract_strided_slice %2 {offsets = [2, 0, 0], sizes = [1, 72, 128], strides = [1, 1, 1]} : vector<3x72x128xf32> to vector<1x72x128xf32>
    %14 = vector.shape_cast %13 : vector<1x72x128xf32> to vector<72x128xf32>
    %cst_6 = arith.constant dense<0.000000e+00> : vector<16x128xf32>
    %15 = tpu.matmul %12, %14, %cst_6 {dimension_numbers = #tpu.dot_dimension_numbers<[1], [0], [0], [1], [0, 0, 1, 1], [], []>} : vector<16x72xf32>, vector<72x128xf32>, vector<16x128xf32> -> vector<16x128xf32>
    %16 = arith.addf %11, %15 : vector<16x128xf32>
    %c0_7 = arith.constant 0 : index
    %c0_8 = arith.constant 0 : index
    %17 = vector.load %arg3[%c0_7, %c0_8] : memref<1x128xf32, #tpu.memory_space<vmem>>, vector<1x128xf32>
    %18 = vector.broadcast %17 : vector<1x128xf32> to vector<16x128xf32>
    %19 = arith.addf %16, %18 : vector<16x128xf32>
    %20 = arith.negf %19 : vector<16x128xf32>
    %21 = math.exp %20 : vector<16x128xf32>
    %cst_9 = arith.constant 1.000000e+00 : f32
    %22 = vector.broadcast %cst_9 : f32 to vector<16x128xf32>
    %23 = arith.addf %22, %21 : vector<16x128xf32>
    %24 = arith.divf %22, %23 : vector<16x128xf32>
    %25 = arith.mulf %19, %24 : vector<16x128xf32>
    %c0_10 = arith.constant 0 : index
    %c0_11 = arith.constant 0 : index
    %c0_12 = arith.constant 0 : index
    %26 = vector.load %arg4[%c0_10, %c0_11, %c0_12] : memref<1x16x128xf32, #tpu.memory_space<vmem>>, vector<1x16x128xf32>
    %27 = vector.shape_cast %26 : vector<1x16x128xf32> to vector<16x128xf32>
    %28 = vector.shape_cast %25 : vector<16x128xf32> to vector<1x16x128xf32>
    tpu.vector_store %arg4[%c0_10, %c0_11, %c0_12], %28 {strides = array<i32>} : memref<1x16x128xf32, #tpu.memory_space<vmem>>, vector<1x16x128xf32>,
    return
  }
  func.func @transform_0(%arg0: i32) -> (i32, i32, i32) {
    %c0_i32 = arith.constant 0 : i32
    %c0_i32_0 = arith.constant 0 : i32
    %c0_i32_1 = arith.constant 0 : i32
    return %arg0, %c0_i32, %c0_i32_0 : i32, i32, i32
  }
  func.func @transform_1(%arg0: i32) -> (i32, i32, i32) {
    %c0_i32 = arith.constant 0 : i32
    %c0_i32_0 = arith.constant 0 : i32
    %c0_i32_1 = arith.constant 0 : i32
    %c0_i32_2 = arith.constant 0 : i32
    return %c0_i32, %c0_i32_0, %c0_i32_1 : i32, i32, i32
  }
  func.func @transform_2(%arg0: i32) -> (i32, i32) {
    %c0_i32 = arith.constant 0 : i32
    %c0_i32_0 = arith.constant 0 : i32
    %c0_i32_1 = arith.constant 0 : i32
    return %c0_i32, %c0_i32_0 : i32, i32
  }
  func.func @transform_3(%arg0: i32) -> (i32, i32, i32) {
    %c0_i32 = arith.constant 0 : i32
    %c0_i32_0 = arith.constant 0 : i32
    %c0_i32_1 = arith.constant 0 : i32
    return %arg0, %c0_i32, %c0_i32_0 : i32, i32, i32
  }
}

</mosaic_0001>

<bundles_post_ra>
// kernel: tpu_custom_call.1
= control target key start
LH: loop header
LB: loop body
LE: loop exit
PB: predicated region body
PF: predicated region fallthrough
CT: control target
= control target key end

     0   :  { %8 = vsyncpa [#allocation3], 0  ;;  %s783_s0 = inlined_call_operand.vmem [shape: f32[2,18,72], index: 0, kind: input, shape index: {}]   ;;  %s784_s1 = inlined_call_operand.hbm [shape: f32[3,72,128], index: 1, kind: input, shape index: {}]   ;;  %s785_s2 = inlined_call_operand.vmem [shape: f32[1,128], index: 2, kind: input, shape index: {}]   ;;  %s786_s3 = inlined_call_operand.hbm [shape: f32[2,16,128], index: 3, kind: output, shape index: {}]  }
   0x1   :  { %9 = vsyncpa [#allocation4], 0 }
   0x2   :  { %11 = vsyncpa [#allocation4 + $0x1], 0  ;;  %s671_s12 = smov 0   ;;  %s673_s13 = smov 0  }
   0x3   :  { %s675_s14 = smov 0   ;;  %s677_s15 = smov 0  }
   0x4 LB: > { %s692_s16 = sadd.s32 4294967295, %s644_s15   ;;  %s453_s17 = sadd.s32 4294967294, %s644_s15   ;;  %s644_s15 = sphi %s677_s15, %s792_s15   ;;  %s640_s14 = sphi %s675_s14, %s791_s14   ;;  %s636_s13 = sphi %s673_s13, %s790_s13   ;;  %s632_s12 = sphi %s671_s12, %s789_s12  }
   0x5   : > { %s696_s18 = sadd.s32 1, %s644_s15   ;;  %s92_s19 = sadd.s32 1, %s640_s14 }
   0x6   : > { %s89_s20 = ssub.s32 %s644_s15, %s696_s18  ;;  %p102_p0 = scmp.ne.s32.totalorder %s640_s14, %s636_s13 }
   0x7   : > { %p90_p1 = scmp.eq.s32.totalorder %s89_s20, 0  ;;  %p103_p2 = scmp.eq.s32.totalorder %s692_s16, 1 }
   0x8   : > { %p108_p3 = scmp.ne.s32.totalorder %s636_s13, %s632_s12  ;;  %p109_p4 = scmp.eq.s32.totalorder %s453_s17, 1 }
   0x9   : > { %s707_s21 = scalar_select %p90_p1, %s640_s14, %s92_s19  }
   0xa   : > { %p709_p5 = por %p103_p2, %p102_p0  ;;  %p713_p6 = por %p109_p4, %p108_p3 }
   0xb   : > { %p454_p7 = scmp.ge.s32.totalorder %s644_s15, 1  ;;  %p116_p8 = scmp.lt.s32.totalorder %s644_s15, 3 }
   0xc   : > { %p499_p9 = scmp.eq.s32.totalorder %s692_s16, 0  ;;  %s127_s26 = sshll.u32 %s784_s1, 4  ;;  %s128_s26 = int_to_ptr.hbm [resolvable:$true] %s127_s26 }
   0xd   : > { %p117_p10 = pnand %p454_p7, %p116_p8  ;;  %s646_s27 = smov [#allocation2]  }
   0xe   : > { %s129_s28 = sshll.u32 %s646_s27, 4  ;;  %s647_s29 = smov 128   ;;  %s130_s28 = int_to_ptr.vmem [resolvable:$true] %s129_s28 }
   0xf   : > { %p491_p11 = pneg %p117_p10  ;;  %s648_s30 = smov 8  }
  0x10   : > { %156 = sbr.rel (%p117_p10) target bundleno = 218 (0xda), region = 32 }
  0x11   : > { %p492_p12 = pnand %p499_p9, %p491_p11 }
  0x13   : > { %494 = dma.hbm_to_vmem [thread:$0]  (!%p492_p12), %s128_s26, 3456, %s130_s28, [#allocation3], %s647_s29, %s647_s29, %s648_s30  }
  0x15   : > { %623 = dma.done.wait (%p499_p9), [#allocation3], 3456  }
  0x16   : > { %625 = vsyncadd (%p499_p9), [#allocation3], 4294963840  ;;  %p181_p13 = scmp.lt.s32.totalorder %s692_s16, 1  ;;  %v215_v0 = vld [vmem:[#allocation2 + $0xd0] sm:$0xff]  ;;  %v214_v1 = vld [vmem:[#allocation2 + $0xc8] sm:$0xff]  ;;  %vm280_vm0 = vcmask 1045504  }
  0x17   : > { %v206_v2 = vld [vmem:[#allocation2 + $0x88] sm:$0xff]  ;;  %297 = vmatpush.msra.mxu2 %v215_v0  ;;  %v197_v3 = vld [vmem:[#allocation2 + $0x40] sm:$0xff]  ;;  %v196_v6 = vld [vmem:[#allocation2 + $0x38] sm:$0xff]  ;;  %vm219_vm1 = vcmask 1046528   ;;  %vm225_vm2 = vcmask 588800   ;;  %s178_s11 = sand.u32 1, %s636_s13  }
  0x18   : > { %s182_s4 = scalar_select %p181_p13, %s692_s16, 1  ;;  %237 = vmatpush.msra.mxu0 %v206_v2  ;;  %v205_v4 = vld [vmem:[#allocation2 + $0x80] sm:$0xff]  ;;  %264 = vmatpush.msra.mxu1 %v197_v3  ;;  %v204_v7 = vld [vmem:[#allocation2 + $0x78] sm:$0xff]  ;;  %v195_v8 = vld [vmem:[#allocation2 + $0x30] sm:$0xff] }
  0x19   : > { %v213_v5 = vld [vmem:[#allocation2 + $0xc0] sm:$0xff]  ;;  %475 = vmatpush.msra.mxu3 %v206_v2  ;;  %298 = vmatpush.msra.mxu2 %v214_v1  ;;  %v212_v9 = vld [vmem:[#allocation2 + $0xb8] sm:$0xff]  ;;  %v203_v10 = vld [vmem:[#allocation2 + $0x70] sm:$0xff]  ;;  %s459_s17 = sshll.u32 %s178_s11, 4  ;;  %s474_s19 = sshll.u32 %s692_s16, 4 }
  0x1a   : > { %s484_s5 = smul.u32 24, %s182_s4  ;;  %238 = vmatpush.msra.mxu0 %v205_v4  ;;  %265 = vmatpush.msra.mxu1 %v196_v6  ;;  %v194_v11 = vld [vmem:[#allocation2 + $0x28] sm:$0xff]  ;;  %v211_v12 = vld [vmem:[#allocation2 + $0xb0] sm:$0xff]  ;;  %v193_v15 = vld [vmem:[#allocation2 + $0x20] sm:$0xff]  ;;  %s375_s25 = scalar_lea.hbm %s786_s3, %s474_s19 }
  0x1b   : > { %476 = vmatpush.msra.mxu3 %v205_v4  ;;  %299 = vmatpush.msra.mxu2 %v213_v5  ;;  %v202_v13 = vld [vmem:[#allocation2 + $0x68] sm:$0xff]  ;;  %v201_v16 = vld [vmem:[#allocation2 + $0x60] sm:$0xff]  ;;  %v192_v19 = vld [vmem:[#allocation2 + $0x18] sm:$0xff]  ;;  %s180_s26 = scalar_lea.vmem [#allocation5], %s459_s17  ;;  %s378_s28 = sshll.u32 %s375_s25, 4  ;;  %s379_s28 = int_to_ptr.hbm [resolvable:$true] %s378_s28 }
  0x1c   : > { %239 = vmatpush.msra.mxu0 %v204_v7  ;;  %s185_s8 = scalar_lea.vmem %s783_s0, %s484_s5  ;;  %266 = vmatpush.msra.mxu1 %v195_v8  ;;  %v210_v14 = vld [vmem:[#allocation2 + $0xa8] sm:$0xff]  ;;  %v209_v20 = vld [vmem:[#allocation2 + $0xa0] sm:$0xff]  ;;  %v200_v21 = vld [vmem:[#allocation2 + $0x58] sm:$0xff]  ;;  %s376_s27 = sshll.u32 %s180_s26, 4  ;;  %s377_s27 = int_to_ptr.vmem [resolvable:$true] %s376_s27 }
  0x1d   : > { %477 = vmatpush.msra.mxu3 %v204_v7  ;;  %300 = vmatpush.msra.mxu2 %v212_v9  ;;  %v186_v17 = vld [vmem:[%s185_s8] sm:$0xff]  ;;  %v187_v18 = vld [vmem:[%s185_s8 + $0x8] sm:$0xff]  ;;  %v191_v22 = vld [vmem:[#allocation2 + $0x10] sm:$0xff]  ;;  %s364_s16 = scalar_lea.sflag [#allocation4], %s178_s11  ;;  %s592_s29 = sshra.s32 %s379_s28, 4  ;;  %s593_s29 = int_to_ptr.hbm [resolvable:$true] %s592_s29 }
  0x1e   : > { %240 = vmatpush.msra.mxu0 %v203_v10  ;;  %267 = vmatpush.msra.mxu1 %v194_v11  ;;  %v281_v23 = vrot.slane %v186_v17, 2  ;;  %v282_v24 = vrot.slane %v187_v18, 2  ;;  %v188_v25 = vld [vmem:[%s185_s8 + $0x10] sm:$0x3]  ;;  %v208_v26 = vld [vmem:[#allocation2 + $0x98] sm:$0xff]  ;;  %v220_v28 = vrot.slane %v186_v17, 1  ;;  %p599_p3 = scmp.lt.s32.totalorder %s593_s29, %s786_s3 }
  0x1f   : > { %478 = vmatpush.msra.mxu3 %v203_v10  ;;  %301 = vmatpush.msra.mxu2 %v211_v12  ;;  %v199_v27 = vld [vmem:[#allocation2 + $0x50] sm:$0xff]  ;;  %v221_v29 = vrot.slane %v187_v18, 1  ;;  %v190_v30 = vld [vmem:[#allocation2 + $0x8] sm:$0xff]  ;;  %v223_v33 = vrot.slane %v188_v25, 1  ;;  %v189_v35 = vld [vmem:[#allocation2] sm:$0xff]  ;;  %v284_v38 = vrot.slane %v188_v25, 2 }
  0x20   : > { %241 = vmatpush.msra.mxu0 %v202_v13  ;;  %268 = vmatpush.msra.mxu1 %v193_v15  ;;  %v207_v31 = vld [vmem:[#allocation2 + $0x90] sm:$0xff]  ;;  %v198_v32 = vld [vmem:[#allocation2 + $0x48] sm:$0xff]  ;;  %v283_v34 = vsel %vm280_vm0, %v281_v23, %v282_v24  ;;  %v539_v43 = vld [vmem:[%s785_s2] ss:$0 sm:$0xff]  ;;  %s594_s30 = scalar_lea.hbm %s593_s29, 16  ;;  %s598_s6 = scalar_lea.hbm %s786_s3, 32 }
  0x21   : > { %479 = vmatpush.msra.mxu3 %v202_v13  ;;  %302 = vmatpush.msra.mxu2 %v210_v14  ;;  %v222_v36 = vsel %vm219_vm1, %v220_v28, %v221_v29  ;;  %v224_v37 = vsel %vm219_vm1, %v221_v29, %v223_v33  ;;  %v285_v39 = vsel %vm280_vm0, %v282_v24, %v284_v38  ;;  %p595_p0 = scmp.ne.s32.totalorder %s593_s29, %s594_s30  ;;  %p600_p4 = scmp.lt.s32.totalorder %s598_s6, %s594_s30 }
  0x22   : > { %242 = vmatpush.msra.mxu0 %v201_v16  ;;  %269 = vmatpush.msra.mxu1 %v192_v19 }
  0x23   : > { %480 = vmatpush.msra.mxu3 %v201_v16  ;;  %303 = vmatpush.msra.mxu2 %v209_v20  ;;  %p596_p1 = pnand %p595_p0, %p709_p5  ;;  %p601_p7 = por %p600_p4, %p599_p3 }
  0x24   : > { %243 = vmatpush.msra.mxu0 %v200_v21  ;;  %270 = vmatpush.msra.mxu1 %v191_v22 }
  0x25   : > { %481 = vmatpush.msra.mxu3 %v200_v21  ;;  %304 = vmatpush.msra.mxu2 %v208_v26  ;;  %p597_p2 = pneg %p596_p1 }
  0x26   : > { %244 = vmatpush.msra.mxu0 %v199_v27  ;;  %271 = vmatpush.msra.mxu1 %v190_v30 }
  0x27   : > { %482 = vmatpush.msra.mxu3 %v199_v27  ;;  %305 = vmatpush.msra.mxu2 %v207_v31  ;;  %p602_p8 = pnand %p601_p7, %p597_p2 }
  0x28   : > { %245 = vmatpush.msra.mxu0 %v198_v32  ;;  %465 = vmatmul.msk.f32.vlgmr.msra.gmra.mxu2 %vm225_vm2, %v283_v34 }
  0x29   : > { %272 = vmatpush.msra.mxu1 %v189_v35  ;;  %461 = vmatmul.msk.f32.vlgmr.msra.gmra.mxu0 %vm225_vm2, %v222_v36 }
  0x2a   : > { %463 = vmatmul.msk.f32.vlgmr.msra.gmra.mxu1 %vm225_vm2, %v186_v17  ;;  %483 = vmatpush.msra.mxu3 %v198_v32 }
  0x2b   : > { %462 = vmatmul.msk.f32.vlgmr.msra.gmra.mxu3 %vm225_vm2, %v224_v37 }
  0x30   : > { %466 = vmatmul.msk.f32.gmra.mxu2 %vm225_vm2, %v285_v39 }
  0x32   : > { %464 = vmatmul.msk.f32.gmra.mxu1 %vm225_vm2, %v187_v18 }
  0xa6   : > { %v247_v40 = vpop.f32.mrf.mxu0 }
  0xa7   : > { %v274_v41 = vpop.f32.mrf.mxu1 }
  0xa8   : > { %v275_v42 = vadd.f32 %v274_v41, %v247_v40 }
  0xab   : > { %v307_v44 = vpop.f32.mrf.mxu2 }
  0xac   : > { %v313_v45 = vadd.f32 %v307_v44, %v275_v42 }
  0xae   : > { %v319_v46 = vadd.f32 %v539_v43, %v313_v45  ;;  %v250_v47 = vpop.f32.mrf.mxu3 }
  0xaf   : > { %v277_v48 = vpop.f32.mrf.mxu1 }
  0xb0   : > { %v467_v49 = vmul.f32 -1.442695, %v319_v46  ;;  %v278_v50 = vadd.f32 %v277_v48, %v250_v47 }
  0xb2   : > { %540 = vpow2.f32 %v467_v49 }
  0xb3   : > { %v310_v51 = vpop.f32.mrf.mxu2 }
  0xb4   : > { %v314_v52 = vadd.f32 %v310_v51, %v278_v50 }
  0xb6   : > { %v320_v53 = vadd.f32 %v539_v43, %v314_v52 }
  0xb8   : > { %v541_v54 = vpop.eup %540  ;;  %v468_v55 = vmul.f32 -1.442695, %v320_v53 }
  0xb9   : > { %v327_v56 = vadd.f32 1.0, %v541_v54 }
  0xba   : > { %542 = vpow2.f32 %v468_v55 }
  0xbb   : > { %544 = vrcp.f32 %v327_v56  ;;  %v340_v62 = vand.u32 2147483648, %v327_v56  ;;  %v338_v0 = vand.u32 2147483647, %v327_v56  ;;  %vm334_vm4 = vweird.f32 %v327_v56 }
  0xbd   : > { %v341_v3 = vor.u32 1.1754944e-38, %v340_v62  ;;  %vm339_vm6 = vcmp.eq.f32.partialorder %v338_v0, 8.507059e+37 }
  0xc0   : > { %v543_v57 = vpop.eup %542 }
  0xc1   : > { %v545_v58 = vpop.eup %544  ;;  %v328_v59 = vadd.f32 1.0, %v543_v57 }
  0xc2   : > { %v330_v60 = vmul.f32 %v545_v58, %v327_v56  ;;  %vm335_vm3 = vweird.f32 %v545_v58 }
  0xc3   : > { %546 = vrcp.f32 %v328_v59  ;;  %vm336_vm5 = vmor %vm334_vm4, %vm335_vm3  ;;  %v355_v9 = vand.u32 2147483648, %v328_v59  ;;  %v353_v11 = vand.u32 2147483647, %v328_v59  ;;  %vm349_vm8 = vweird.f32 %v328_v59 }
  0xc4   : > { %v331_v61 = vsub.f32 1.0, %v330_v60 }
  0xc5   : > { %v356_v13 = vor.u32 1.1754944e-38, %v355_v9  ;;  %vm354_vm10 = vcmp.eq.f32.partialorder %v353_v11, 8.507059e+37 }
  0xc6   : > { %v332_v63 = vmul.f32 %v545_v58, %v331_v61 }
  0xc8   : > { %v333_v1 = vadd.f32 %v545_v58, %v332_v63 }
  0xc9   : > { %v547_v2 = vpop.eup %546 }
  0xca   : > { %v337_v4 = vsel %vm336_vm5, %v545_v58, %v333_v1  ;;  %v345_v5 = vmul.f32 %v547_v2, %v328_v59  ;;  %vm350_vm7 = vweird.f32 %v547_v2 }
  0xcb   : > { %v342_v6 = vsel %vm339_vm6, %v341_v3, %v337_v4  ;;  %vm351_vm9 = vmor %vm349_vm8, %vm350_vm7 }
  0xcc   : > { %v359_v7 = vmul.f32 %v342_v6, %v319_v46  ;;  %v346_v8 = vsub.f32 1.0, %v345_v5 }
  0xce   : > { %361 = vst [vmem:[%s180_s26] sm:$0xff] %v359_v7  ;;  %v347_v10 = vmul.f32 %v547_v2, %v346_v8 }
  0xd0   : > { %v348_v12 = vadd.f32 %v547_v2, %v347_v10 }
  0xd2   : > { %v352_v14 = vsel %vm351_vm9, %v547_v2, %v348_v12 }
  0xd3   : > { %v357_v15 = vsel %vm354_vm10, %v356_v13, %v352_v14 }
  0xd4   : > { %v360_v16 = vmul.f32 %v357_v15, %v320_v53 }
  0xd6   : > { %362 = vst [vmem:[%s180_s26 + $0x8] sm:$0xff] %v360_v16 }
  0xd7   : > { %605 = shalt.err (!%p602_p8)
}
  0xd8   : > { %s649_s9 = smov 128   ;;  %s650_s10 = smov 8  }
  0xd9   : > { %489 = dma.vmem_to_hbm [thread:$0]  (%p709_p5), %s377_s27, 256, %s379_s28, %s364_s16, %s649_s9, %s649_s9, %s650_s10  }
  0xda PF: > { %p501_p9 = scmp.ge.s32.totalorder %s644_s15, 2  ;;  %s393_s11 = sand.u32 1, %s632_s12  }
  0xdb   : > { %s394_s17 = scalar_lea.sflag [#allocation4], %s393_s11 }
  0xdc   : > { %p496_p10 = pnand %p501_p9, %p713_p6 }
  0xde   : > { %p497_p11 = pneg %p496_p10 }
  0xe0   : > { %627 = dma.done.wait (%p497_p11), %s394_s17, 256  }
  0xe1   : > { %629 = vsyncadd (%p497_p11), %s394_s17, 4294967040  ;;  %p14_p12 = scmp.ge.s32.totalorder %s696_s18, 4   ;;  %s789_s12 = smov %s636_s13 }
  0xe2   : > { %s790_s13 = smov %s640_s14  ;;  %s791_s14 = smov %s707_s21 }
  0xe3   : > { %s792_s15 = smov %s696_s18  ;;  %16 = sbr.rel (!%p14_p12) target bundleno = 4 (0x4), region = 72 }
  0xe8   :  { %400 = vsyncpa [#allocation3], 1 }
  0xe9   :  { %402 = vsyncpa [#allocation3 + $0x1], 1 }
  0xea   :  { %403 = vsyncpa [#allocation4], 1 }
  0xeb   :  { %405 = vsyncpa [#allocation4 + $0x1], 1 }

</bundles_post_ra>
